<compile_context>
chip_gen: v5e
topology: v5e:2x2
jax: 0.10.0
libtpu: 0.0.40
codegen_flags: <defaults>
</compile_context>

<pallas_src>
import math

import jax
import jax.numpy as jnp
from jax.experimental import pallas as pl
from jax.experimental.pallas import tpu as pltpu

_LANE = 128
_MIN_ROW_STEPS = 8  # target grid steps along rows (pipeline + v7x dual-TC headroom)


def _ew_linear_kernel(w_ref, b_ref, x_ref, o_ref):
    # w_ref / b_ref are (1, tile_c); the VPU broadcasts them across the sublane
    # axis of the (tile_b, tile_c) x block per-vreg -- no materialized
    # (tile_b, tile_c) copy.  Kernel is HBM-bandwidth-bound, so this VPU work
    # is free filler.
    o_ref[...] = (x_ref[...] * w_ref[...] + b_ref[...]).astype(o_ref.dtype)


def _round_up(n, m):
    return ((n + m - 1) // m) * m


def _divisors(n):
    ds = []
    i = 1
    while i * i <= n:
        if n % i == 0:
            ds.append(i)
            ds.append(n // i)
        i += 1
    return ds


def _largest_divisor_multiple(n, cap, mult):
    """Largest d with n % d == 0, d % mult == 0, d <= cap; None if none."""
    best = None
    for d in _divisors(n):
        if d <= cap and d % mult == 0 and (best is None or d > best):
            best = d
    return best


def elementwise_linear(x, w, b, *,
                       target_tile_bytes=4 * 1024 * 1024,
                       min_tile_bytes=512 * 1024,
                       min_pallas_bytes=256 * 1024,
                       force_pallas=False):
    """y = w * x + b with w, b of shape (C,), x of shape (..., C)."""
    orig_shape = x.shape
    C = orig_shape[-1]
    assert w.shape == (C,), f"w shape {w.shape} != ({C},)"
    assert b.shape == (C,), f"b shape {b.shape} != ({C},)"

    # Promote once so the kernel's store dtype is unambiguous.
    out_dtype = jnp.result_type(x.dtype, w.dtype, b.dtype)
    x = x.astype(out_dtype)
    w = w.astype(out_dtype)
    b = b.astype(out_dtype)
    itemsize = jnp.dtype(out_dtype).itemsize
    # Dtype-aware sublane multiple: f32 -> 8, bf16 -> 16, int8/fp8 -> 32.
    sub = max(8, 32 // itemsize)

    # Tiny-problem short-circuit: a standalone custom call can't beat XLA
    # fusing this FMA into its producer/consumer.
    if (not force_pallas) and (x.size * itemsize < min_pallas_bytes):
        return w * x + b

    # Collapse all leading dims into one batch axis.
    B = x.size // C
    x2 = x.reshape(B, C)
    w_row = w.reshape(1, C)
    b_row = b.reshape(1, C)
    B2, C2 = B, C

    # Lane-dense repack: fold rows so the last dim becomes a multiple of 128
    # (unmasked full-width vst).  fold = lcm(C, 128) // C, applied when it
    # divides B (handles C = 32, 48, 96, 192, ...).
    fold = _LANE // math.gcd(C, _LANE)
    if fold > 1 and B % fold == 0:
        B2, C2 = B // fold, fold * C
        x2 = x2.reshape(B2, C2)
        w_row = jnp.tile(w, fold).reshape(1, C2)
        b_row = jnp.tile(b, fold).reshape(1, C2)
    # TODO(synk): when the fold does not divide B and C2 % 128 != 0 we accept
    # masked partial stores instead of padding the channel axis (padding would
    # add >1x HBM traffic for small C, which is worse on a BW-bound op).

    # ---- channel tile: full rows unless one sublane stripe blows the budget.
    if C2 % _LANE == 0:
        if sub * C2 * itemsize <= target_tile_bytes:
            tile_c = C2
        else:
            budget_c = max(_LANE,
                           (target_tile_bytes // (sub * itemsize)) // _LANE * _LANE)
            # 128 always divides C2 here, so this never returns None.
            tile_c = _largest_divisor_multiple(C2, budget_c, _LANE)
    else:
        tile_c = C2  # a non-128-multiple last dim must be spanned fully

    # ---- row tile: ~target_tile_bytes per tile, and >= _MIN_ROW_STEPS grid
    # steps as long as that does not shrink tiles below min_tile_bytes.
    row_budget = max(sub, (target_tile_bytes // (tile_c * itemsize)) // sub * sub)
    steps_rows = _round_up(max(1, pl.cdiv(B2, _MIN_ROW_STEPS)), sub)
    min_rows = max(sub, (min_tile_bytes // (tile_c * itemsize)) // sub * sub)
    tile_cap = max(sub, min(row_budget, max(steps_rows, min_rows)))

    if B2 <= tile_cap:
        tile_b, B2p = B2, B2                 # single row tile (full extent is legal)
    else:
        d = _largest_divisor_multiple(B2, tile_cap, sub)
        if d is not None and 2 * d >= tile_cap:
            tile_b, B2p = d, B2              # exact divisor, no padding needed
        else:
            tile_b = tile_cap                # pad rows up to a multiple of tile_b
            B2p = _round_up(B2, tile_b)

    if B2p != B2:
        x2 = jnp.pad(x2, ((0, B2p - B2), (0, 0)))

    grid_c = C2 // tile_c
    grid_b = B2p // tile_b
    # Channel axis OUTER (slowest): the (1, tile_c) w/b blocks re-DMA only when
    # the channel tile changes (once total when grid_c == 1).
    grid = (grid_c, grid_b)

    cost = pl.CostEstimate(
        flops=2 * B2p * C2,
        transcendentals=0,
        bytes_accessed=(2 * B2p * C2 + 2 * grid_c * tile_c) * itemsize,
    )

    y2 = pl.pallas_call(
        _ew_linear_kernel,
        out_shape=jax.ShapeDtypeStruct((B2p, C2), out_dtype),
        grid_spec=pltpu.PrefetchScalarGridSpec(
            num_scalar_prefetch=0,
            grid=grid,
            in_specs=[
                pl.BlockSpec((1, tile_c), lambda j, i: (0, j)),        # w (resident per channel tile)
                pl.BlockSpec((1, tile_c), lambda j, i: (0, j)),        # b
                pl.BlockSpec((tile_b, tile_c), lambda j, i: (i, j)),   # x
            ],
            out_specs=pl.BlockSpec((tile_b, tile_c), lambda j, i: (i, j)),
        ),
        compiler_params=pltpu.CompilerParams(
            dimension_semantics=("parallel", "parallel"),
            vmem_limit_bytes=48 * 1024 * 1024,
        ),
        cost_estimate=cost,
    )(w_row, b_row, x2)

    if B2p != B2:
        y2 = y2[:B2]
    return y2.reshape(orig_shape)


def _check(x, w, b, name, atol, **kw):
    y = jax.block_until_ready(elementwise_linear(x, w, b, force_pallas=True, **kw))
    y_ref = w * x + b
    assert y.shape == x.shape, f"{name}: shape {y.shape} != {x.shape}"
    ok = jnp.allclose(y.astype(jnp.float32), y_ref.astype(jnp.float32),
                      atol=atol, rtol=atol)
    assert bool(ok), f"{name}: mismatch vs reference"


if __name__ == "__main__":
    key = jax.random.PRNGKey(0)
    ks = jax.random.split(key, 12)

    # 1) Module-sized case: batch=8, in_channel=32 (nn.Parameter(Tensor(C)) is
    #    uninitialized in the reference; use a reproducible random init).
    #    Lane-dense fold path: (8, 32) -> (2, 128), grid (1, 1).
    x = jax.random.normal(ks[0], (8, 32), dtype=jnp.float32)
    w = jax.random.normal(ks[1], (32,), dtype=jnp.float32)
    b = jax.random.normal(ks[2], (32,), dtype=jnp.float32)
    _check(x, w, b, "fold_C32", atol=1e-5)

    # 2) Lane-aligned C, multi-step row grid (small tile budgets force grid (1, 4)).
    x = jax.random.normal(ks[3], (64, 256), dtype=jnp.float32)
    w = jax.random.normal(ks[4], (256,), dtype=jnp.float32)
    b = jax.random.normal(ks[5], (256,), dtype=jnp.float32)
    _check(x, w, b, "multi_row_tiles", atol=1e-5,
           target_tile_bytes=64 * 1024, min_tile_bytes=16 * 1024)

    # 3) bf16 + leading dims + row padding: B=20 is not a multiple of the bf16
    #    sublane count (16) -> padded to 32 rows, grid (1, 2), output sliced back.
    x = jax.random.normal(ks[6], (4, 5, 512), dtype=jnp.bfloat16)
    w = jax.random.normal(ks[7], (512,), dtype=jnp.bfloat16)
    b = jax.random.normal(ks[8], (512,), dtype=jnp.bfloat16)
    _check(x, w, b, "bf16_padded_rows", atol=5e-2,
           target_tile_bytes=16 * 1024, min_tile_bytes=8 * 1024)

    # 4) Channel-split path (channel axis outer, w/b re-fetched once per
    #    channel tile): grid (2, 3) with tile_c=256, tile_b=8.
    x = jax.random.normal(ks[9], (24, 512), dtype=jnp.float32)
    w = jax.random.normal(ks[10], (512,), dtype=jnp.float32)
    b = jax.random.normal(ks[11], (512,), dtype=jnp.float32)
    _check(x, w, b, "channel_split", atol=1e-5,
           target_tile_bytes=8 * 1024, min_tile_bytes=4 * 1024)

    print("KERNEL_OK")
</pallas_src>

<mosaic_0001>
module attributes {stable_mosaic.version = 11 : i64} {
  func.func @_ew_linear_kernel(%arg0: i32, %arg1: i32, %arg2: memref<1x128xf32, #tpu.memory_space<vmem>>, %arg3: memref<1x128xf32, #tpu.memory_space<vmem>>, %arg4: memref<2x128xf32, #tpu.memory_space<vmem>>, %arg5: memref<2x128xf32, #tpu.memory_space<vmem>>) attributes {dimension_semantics = [#tpu.dimension_semantics<parallel>, #tpu.dimension_semantics<parallel>], iteration_bounds = array<i64: 1, 1>, scalar_prefetch = 0 : i64, scratch_operands = 0 : i64, tpu.core_type = #tpu.core_type<tc>, window_params = [{transform_indices = @transform_0, window_bounds = array<i64: 1, 128>}, {transform_indices = @transform_1, window_bounds = array<i64: 1, 128>}, {transform_indices = @transform_2, window_bounds = array<i64: 2, 128>}, {transform_indices = @transform_3, window_bounds = array<i64: 2, 128>}]} {
    %c0 = arith.constant 0 : index
    %c0_0 = arith.constant 0 : index
    %0 = vector.load %arg4[%c0, %c0_0] : memref<2x128xf32, #tpu.memory_space<vmem>>, vector<2x128xf32>
    %c0_1 = arith.constant 0 : index
    %c0_2 = arith.constant 0 : index
    %1 = vector.load %arg2[%c0_1, %c0_2] : memref<1x128xf32, #tpu.memory_space<vmem>>, vector<1x128xf32>
    %2 = vector.broadcast %1 : vector<1x128xf32> to vector<2x128xf32>
    %3 = arith.mulf %0, %2 : vector<2x128xf32>
    %c0_3 = arith.constant 0 : index
    %c0_4 = arith.constant 0 : index
    %4 = vector.load %arg3[%c0_3, %c0_4] : memref<1x128xf32, #tpu.memory_space<vmem>>, vector<1x128xf32>
    %5 = vector.broadcast %4 : vector<1x128xf32> to vector<2x128xf32>
    %6 = arith.addf %3, %5 : vector<2x128xf32>
    %c0_5 = arith.constant 0 : index
    %c0_6 = arith.constant 0 : index
    %7 = vector.load %arg5[%c0_5, %c0_6] : memref<2x128xf32, #tpu.memory_space<vmem>>, vector<2x128xf32>
    tpu.vector_store %arg5[%c0_5, %c0_6], %6 {strides = array<i32>} : memref<2x128xf32, #tpu.memory_space<vmem>>, vector<2x128xf32>,
    return
  }
  func.func @transform_0(%arg0: i32, %arg1: i32) -> (i32, i32) {
    %c0_i32 = arith.constant 0 : i32
    %c0_i32_0 = arith.constant 0 : i32
    return %c0_i32, %arg0 : i32, i32
  }
  func.func @transform_1(%arg0: i32, %arg1: i32) -> (i32, i32) {
    %c0_i32 = arith.constant 0 : i32
    %c0_i32_0 = arith.constant 0 : i32
    return %c0_i32, %arg0 : i32, i32
  }
  func.func @transform_2(%arg0: i32, %arg1: i32) -> (i32, i32) {
    %c0_i32 = arith.constant 0 : i32
    return %arg1, %arg0 : i32, i32
  }
  func.func @transform_3(%arg0: i32, %arg1: i32) -> (i32, i32) {
    %c0_i32 = arith.constant 0 : i32
    return %arg1, %arg0 : i32, i32
  }
}

</mosaic_0001>

<bundles_post_ra>
// kernel: tpu_custom_call.1
= control target key start
LH: loop header
LB: loop body
LE: loop exit
PB: predicated region body
PF: predicated region fallthrough
CT: control target
= control target key end

     0   :  { %8 = vsyncpa [#allocation3], 0  ;;  %s230_s0 = inlined_call_operand.hbm [shape: f32[1,128], index: 0, kind: input, shape index: {}]   ;;  %s231_s1 = inlined_call_operand.hbm [shape: f32[1,128], index: 1, kind: input, shape index: {}]   ;;  %s232_s2 = inlined_call_operand.hbm [shape: f32[2,128], index: 2, kind: input, shape index: {}]   ;;  %s233_s3 = inlined_call_operand.hbm [shape: f32[2,128], index: 3, kind: output, shape index: {}]  }
   0x1   :  { %9 = vsyncpa [#allocation6], 0  ;;  %s27_s14 = sshll.u32 %s231_s1, 4  ;;  %s28_s14 = int_to_ptr.hbm [resolvable:$true] %s27_s14 }
   0x2   :  { %10 = vsyncpa [#allocation4], 0  ;;  %s194_s15 = smov [#allocation5]   ;;  %s16_s19 = sshll.u32 %s230_s0, 4  ;;  %s17_s19 = int_to_ptr.hbm [resolvable:$true] %s16_s19 }
   0x3   :  { %s29_s16 = sshll.u32 %s194_s15, 4  ;;  %s195_s20 = smov [#allocation2]   ;;  %s30_s16 = int_to_ptr.vmem [resolvable:$true] %s29_s16 }
   0x4   :  { %32 = dma.hbm_to_vmem [thread:$0]  %s28_s14, 16, %s30_s16, [#allocation6]  }
   0x5   :  { %s18_s21 = sshll.u32 %s195_s20, 4  ;;  %s38_s24 = sshll.u32 %s232_s2, 4  ;;  %s19_s21 = int_to_ptr.vmem [resolvable:$true] %s18_s21  ;;  %s39_s24 = int_to_ptr.hbm [resolvable:$true] %s38_s24 }
   0x6   :  { %21 = dma.hbm_to_vmem [thread:$0]  %s17_s19, 16, %s19_s21, [#allocation3]  }
   0x7   :  { %s196_s1 = smov [#allocation7]  }
   0x8   :  { %s40_s25 = sshll.u32 %s196_s1, 4  ;;  %s41_s25 = int_to_ptr.vmem [resolvable:$true] %s40_s25 }
   0x9   :  { %43 = dma.hbm_to_vmem [thread:$0]  %s39_s24, 32, %s41_s25, [#allocation6]  }
   0xa   :  { %188 = dma.done.wait [#allocation3], 16  }
   0xb   :  { %189 = vsyncadd [#allocation3], 4294967280 }
   0xc   :  { %190 = dma.done.wait [#allocation6], 48  }
   0xd   :  { %191 = vsyncadd [#allocation6], 4294967248  ;;  %v56_v0 = vld [vmem:[#allocation7] sm:$0x3]  ;;  %v90_v1 = vld [vmem:[#allocation2] ss:$0 sm:$0xff] }
   0xe   :  { %v91_v2 = vld [vmem:[#allocation5] ss:$0 sm:$0xff]  ;;  %s197_s0 = smov [#allocation8]   ;;  %s75_s2 = sshll.u32 %s233_s3, 4  ;;  %v61_v3 = vmul.f32 %v90_v1, %v56_v0  ;;  %s76_s2 = int_to_ptr.hbm [resolvable:$true] %s75_s2 }
   0xf   :  { %s73_s26 = sshll.u32 %s197_s0, 4  ;;  %s74_s26 = int_to_ptr.vmem [resolvable:$true] %s73_s26 }
  0x10   :  { %v66_v4 = vadd.f32 %v91_v2, %v61_v3 }
  0x12   :  { %67 = vst [vmem:[#allocation8] sm:$0x3] %v66_v4 }
  0x13   :  { %78 = dma.vmem_to_hbm [thread:$0]  %s74_s26, 32, %s76_s2, [#allocation4]  }
  0x14   :  { %192 = dma.done.wait [#allocation4], 32  }
  0x15   :  { %193 = vsyncadd [#allocation4], 4294967264 }
  0x16   :  { %83 = vsyncpa [#allocation3], 1 }
  0x17   :  { %84 = vsyncpa [#allocation6], 1 }
  0x18   :  { %85 = vsyncpa [#allocation4], 1 }

</bundles_post_ra>
